<compile_context>
chip_gen: v6e
topology: v6e:2x2x1
jax: 0.10.0
libtpu: 0.0.40
codegen_flags: <defaults>
</compile_context>

<pallas_src>
import functools

import jax
import jax.numpy as jnp
from jax.experimental import pallas as pl
from jax.experimental.pallas import tpu as pltpu


def _round_up(n: int, m: int) -> int:
    return ((n + m - 1) // m) * m


def _vmem_budget_bytes() -> int:
    """~80% of per-TensorCore VMEM; falls back to 64 MiB (safe on every gen)."""
    cap = 64 * 2**20
    try:
        info = pltpu.get_tpu_info()
        cap = int(getattr(info, "vmem_capacity_bytes", cap) or cap)
    except Exception:
        pass
    return int(0.8 * cap)


# ---------------- kernels ----------------

def _mlp_kernel_resident(x_ref, w1_ref, b1_ref, w2_ref, b2_ref, o_ref):
    # Cast x to the compute dtype in-kernel (cheap VPU work hidden under MXU).
    x = x_ref[...].astype(w1_ref.dtype)
    h = jnp.dot(x, w1_ref[...], preferred_element_type=jnp.float32)
    h = jnp.maximum(h + b1_ref[...], 0.0)            # bias + ReLU in f32 (v5e-safe)
    out = jnp.dot(h.astype(w2_ref.dtype), w2_ref[...],
                  preferred_element_type=jnp.float32)
    o_ref[...] = (out + b2_ref[...]).astype(o_ref.dtype)


def _mlp_kernel_ktiled(x_ref, w1_ref, b1_ref, w2_ref, b2_ref, o_ref, acc_ref):
    k = pl.program_id(1)

    @pl.when(k == 0)
    def _():
        acc_ref[...] = jnp.zeros_like(acc_ref)

    x = x_ref[...].astype(w1_ref.dtype)
    acc_ref[...] += jnp.dot(x, w1_ref[...], preferred_element_type=jnp.float32)

    @pl.when(k == pl.num_programs(1) - 1)
    def _():
        h = jnp.maximum(acc_ref[...] + b1_ref[...], 0.0)
        out = jnp.dot(h.astype(w2_ref.dtype), w2_ref[...],
                      preferred_element_type=jnp.float32)
        o_ref[...] = (out + b2_ref[...]).astype(o_ref.dtype)


# ---------------- wrapper ----------------

@functools.partial(
    jax.jit,
    static_argnames=("block_batch", "compute_dtype", "out_dtype",
                     "k_block", "force_k_tiled"))
def mlp_classifier(x, w1, b1, w2, b2, *, block_batch=256,
                   compute_dtype=jnp.bfloat16, out_dtype=None,
                   k_block=None, force_k_tiled=False):
    """x: (B, input_size); w1: (input_size, hidden); b1: (hidden,) or (1, hidden);
    w2: (hidden, num_classes); b2: (num_classes,) or (1, num_classes).
    Returns (B, num_classes) logits."""
    B, in_dim = x.shape
    hid = w1.shape[1]
    ncls = w2.shape[1]
    if out_dtype is None:
        out_dtype = x.dtype

    cbytes = jnp.dtype(compute_dtype).itemsize
    xbytes = jnp.dtype(x.dtype).itemsize
    obytes = jnp.dtype(out_dtype).itemsize

    # Lane-dense feature padding (multiples of 128 -> unmasked stores, full MXU tiles).
    IN_P = _round_up(in_dim, 128)
    HID_P = _round_up(hid, 128)
    OUT_P = _round_up(ncls, 128)

    # Sublane packing for the compute dtype (bf16 packs 16 rows per vreg tile).
    sub = {1: 32, 2: 16, 4: 8}.get(cbytes, 8)
    B_sub = _round_up(B, sub)

    vmem_budget = _vmem_budget_bytes()

    # Single-buffered (Buffered(1)) resident weight footprint.
    resident_w = ((IN_P * HID_P + HID_P * OUT_P) * cbytes
                  + (HID_P + OUT_P) * 4)
    use_k_tiling = bool(force_k_tiled) or (resident_w > vmem_budget // 3)

    # Batch tile: large (amortizes per-step overhead), rounded to sublane packing.
    TB = min(_round_up(max(block_batch, sub), sub), B_sub)

    if use_k_tiling:
        TK = k_block if k_block is not None else 512
        TK = _round_up(min(TK, IN_P), 128)
        IN_PAD = _round_up(IN_P, TK)

        def vmem_need(tb):
            return ((HID_P * OUT_P) * cbytes + (HID_P + OUT_P) * 4  # resident w2/biases
                    + 2 * TK * HID_P * cbytes                       # streamed w1 (dbl-buf)
                    + 2 * tb * TK * xbytes                          # x tiles (dbl-buf)
                    + tb * HID_P * 4                                # f32 accumulator
                    + 2 * tb * OUT_P * obytes                       # out tiles (dbl-buf)
                    + 2 * tb * HID_P * 4)                           # live f32 intermediates
    else:
        IN_PAD = IN_P

        def vmem_need(tb):
            return (resident_w
                    + 2 * tb * IN_PAD * xbytes
                    + 2 * tb * OUT_P * obytes
                    + 2 * tb * HID_P * 4)

    # Shrink the batch tile until the estimate fits the generation-aware budget.
    while TB > sub and vmem_need(TB) > vmem_budget:
        TB = max(sub, _round_up(TB // 2, sub))

    # Guarantee >= 2 batch steps when possible so both v7x TensorCores are used.
    if B_sub // TB < 2 and B_sub >= 2 * sub:
        TB = _round_up(pl.cdiv(B_sub, 2), sub)

    B_P = _round_up(B_sub, TB)

    # ---- operand prep: pad x only if needed (keep its dtype; cast in-kernel).
    need_x_pad = (B_P != B) or (IN_PAD != in_dim)
    x_p = jnp.pad(x, ((0, B_P - B), (0, IN_PAD - in_dim))) if need_x_pad else x
    w1_p = jnp.pad(w1, ((0, IN_PAD - in_dim), (0, HID_P - hid))).astype(compute_dtype)
    b1_p = jnp.pad(b1.reshape(1, -1), ((0, 0), (0, HID_P - hid))).astype(jnp.float32)
    w2_p = jnp.pad(w2, ((0, HID_P - hid), (0, OUT_P - ncls))).astype(compute_dtype)
    b2_p = jnp.pad(b2.reshape(1, -1), ((0, 0), (0, OUT_P - ncls))).astype(jnp.float32)

    vmem_limit = int(min(vmem_budget, max(vmem_need(TB) + (4 << 20), 8 << 20)))

    cost = pl.CostEstimate(
        flops=2 * B_P * (IN_PAD * HID_P + HID_P * OUT_P),
        transcendentals=0,
        bytes_accessed=(x_p.size * xbytes + w1_p.size * cbytes + w2_p.size * cbytes
                       + b1_p.size * 4 + b2_p.size * 4 + B_P * OUT_P * obytes),
    )

    if not use_k_tiling:
        grid = (B_P // TB,)
        out_padded = pl.pallas_call(
            _mlp_kernel_resident,
            out_shape=jax.ShapeDtypeStruct((B_P, OUT_P), out_dtype),
            grid_spec=pltpu.PrefetchScalarGridSpec(
                num_scalar_prefetch=0,
                grid=grid,
                in_specs=[
                    # x: streamed over batch (default double-buffered).
                    pl.BlockSpec((TB, IN_PAD), lambda i: (i, 0)),
                    # Constant-index operands: single-buffered, resident in VMEM.
                    pl.BlockSpec((IN_PAD, HID_P), lambda i: (0, 0),
                                 pipeline_mode=pl.Buffered(1)),
                    pl.BlockSpec((1, HID_P), lambda i: (0, 0),
                                 pipeline_mode=pl.Buffered(1)),
                    pl.BlockSpec((HID_P, OUT_P), lambda i: (0, 0),
                                 pipeline_mode=pl.Buffered(1)),
                    pl.BlockSpec((1, OUT_P), lambda i: (0, 0),
                                 pipeline_mode=pl.Buffered(1)),
                ],
                out_specs=pl.BlockSpec((TB, OUT_P), lambda i: (i, 0)),
            ),
            compiler_params=pltpu.CompilerParams(
                dimension_semantics=("parallel",),
                vmem_limit_bytes=vmem_limit,
            ),
            cost_estimate=cost,
        )(x_p, w1_p, b1_p, w2_p, b2_p)
    else:
        # Large-weights fallback: stream w1 along the input (K) dim with an f32
        # VMEM accumulator; w2/biases stay resident (class count is small).
        grid = (B_P // TB, IN_PAD // TK)
        out_padded = pl.pallas_call(
            _mlp_kernel_ktiled,
            out_shape=jax.ShapeDtypeStruct((B_P, OUT_P), out_dtype),
            grid_spec=pltpu.PrefetchScalarGridSpec(
                num_scalar_prefetch=0,
                grid=grid,
                in_specs=[
                    pl.BlockSpec((TB, TK), lambda i, k: (i, k)),
                    pl.BlockSpec((TK, HID_P), lambda i, k: (k, 0)),
                    pl.BlockSpec((1, HID_P), lambda i, k: (0, 0),
                                 pipeline_mode=pl.Buffered(1)),
                    pl.BlockSpec((HID_P, OUT_P), lambda i, k: (0, 0),
                                 pipeline_mode=pl.Buffered(1)),
                    pl.BlockSpec((1, OUT_P), lambda i, k: (0, 0),
                                 pipeline_mode=pl.Buffered(1)),
                ],
                out_specs=pl.BlockSpec((TB, OUT_P), lambda i, k: (i, 0)),
                scratch_shapes=[pltpu.VMEM((TB, HID_P), jnp.float32)],
            ),
            compiler_params=pltpu.CompilerParams(
                dimension_semantics=("parallel", "arbitrary"),
                vmem_limit_bytes=vmem_limit,
            ),
            cost_estimate=cost,
        )(x_p, w1_p, b1_p, w2_p, b2_p)

    # Strip batch / class padding outside the kernel.
    return out_padded[:B, :ncls]


def make_params(key, input_size, hidden_size, num_classes, dtype=jnp.float32):
    """Deterministic init mirroring nn.Linear (weights stored transposed: (in, out))."""
    k1, k2, k3, k4 = jax.random.split(key, 4)
    bound1 = 1.0 / (input_size ** 0.5)
    bound2 = 1.0 / (hidden_size ** 0.5)
    w1 = jax.random.uniform(k1, (input_size, hidden_size), dtype, -bound1, bound1)
    b1 = jax.random.uniform(k2, (1, hidden_size), dtype, -bound1, bound1)
    w2 = jax.random.uniform(k3, (hidden_size, num_classes), dtype, -bound2, bound2)
    b2 = jax.random.uniform(k4, (1, num_classes), dtype, -bound2, bound2)
    return w1, b1, w2, b2


if __name__ == "__main__":
    key = jax.random.PRNGKey(0)

    # Small shapes consistent with the module's forward.
    batch, input_size, hidden_size, num_classes = 8, 32, 64, 16
    kx, kp = jax.random.split(key)
    x = jax.random.normal(kx, (batch, input_size), jnp.float32)
    w1, b1, w2, b2 = make_params(kp, input_size, hidden_size, num_classes)

    # Pure-JAX reference (same semantics as the PyTorch forward).
    ref = jnp.maximum(x @ w1 + b1, 0.0) @ w2 + b2

    # f32 compute path: tight tolerance vs the reference.
    out_f32 = jax.block_until_ready(
        mlp_classifier(x, w1, b1, w2, b2, compute_dtype=jnp.float32))
    assert out_f32.shape == (batch, num_classes)
    assert jnp.allclose(out_f32, ref, atol=1e-5, rtol=1e-5)

    # bf16 MXU path (f32 accumulation): the perf-recommended mode on v6e/v7x.
    out_bf16 = jax.block_until_ready(
        mlp_classifier(x, w1, b1, w2, b2, compute_dtype=jnp.bfloat16))
    assert out_bf16.shape == (batch, num_classes)
    assert jnp.allclose(out_bf16, ref, atol=5e-2, rtol=5e-2)

    # Exercise the K-tiled (large-weights / v7x 64 MiB VMEM) fallback path.
    batch2, in2, hid2, ncls2 = 64, 384, 128, 32
    kx2, kp2 = jax.random.split(kp)
    x2 = jax.random.normal(kx2, (batch2, in2), jnp.float32)
    w1b, b1b, w2b, b2b = make_params(kp2, in2, hid2, ncls2)
    ref2 = jnp.maximum(x2 @ w1b + b1b, 0.0) @ w2b + b2b
    out2 = jax.block_until_ready(
        mlp_classifier(x2, w1b, b1b, w2b, b2b, compute_dtype=jnp.float32,
                       force_k_tiled=True, k_block=128))
    assert out2.shape == (batch2, ncls2)
    assert jnp.allclose(out2, ref2, atol=1e-4, rtol=1e-4)

    print("KERNEL_OK")
</pallas_src>

<mosaic_0001>
module attributes {stable_mosaic.version = 11 : i64} {
  func.func @_mlp_kernel_resident(%arg0: i32, %arg1: memref<8x128xf32, #tpu.memory_space<vmem>>, %arg2: memref<128x128xf32, #tpu.memory_space<vmem>>, %arg3: memref<1x128xf32, #tpu.memory_space<vmem>>, %arg4: memref<128x128xf32, #tpu.memory_space<vmem>>, %arg5: memref<1x128xf32, #tpu.memory_space<vmem>>, %arg6: memref<8x128xf32, #tpu.memory_space<vmem>>) attributes {dimension_semantics = [#tpu.dimension_semantics<parallel>], iteration_bounds = array<i64: 1>, scalar_prefetch = 0 : i64, scratch_operands = 0 : i64, tpu.core_type = #tpu.core_type<tc>, window_params = [{transform_indices = @transform_0, window_bounds = array<i64: 8, 128>}, {pipeline_mode = #tpu.pipeline_mode<synchronous>, transform_indices = @transform_1, window_bounds = array<i64: 128, 128>}, {pipeline_mode = #tpu.pipeline_mode<synchronous>, transform_indices = @transform_2, window_bounds = array<i64: 1, 128>}, {pipeline_mode = #tpu.pipeline_mode<synchronous>, transform_indices = @transform_3, window_bounds = array<i64: 128, 128>}, {pipeline_mode = #tpu.pipeline_mode<synchronous>, transform_indices = @transform_4, window_bounds = array<i64: 1, 128>}, {transform_indices = @transform_5, window_bounds = array<i64: 8, 128>}]} {
    %c0 = arith.constant 0 : index
    %c0_0 = arith.constant 0 : index
    %0 = vector.load %arg1[%c0, %c0_0] : memref<8x128xf32, #tpu.memory_space<vmem>>, vector<8x128xf32>
    %c0_1 = arith.constant 0 : index
    %c0_2 = arith.constant 0 : index
    %1 = vector.load %arg2[%c0_1, %c0_2] : memref<128x128xf32, #tpu.memory_space<vmem>>, vector<128x128xf32>
    %cst = arith.constant dense<0.000000e+00> : vector<8x128xf32>
    %2 = tpu.matmul %0, %1, %cst {dimension_numbers = #tpu.dot_dimension_numbers<[1], [0], [0], [1], [0, 0, 1, 1], [], []>} : vector<8x128xf32>, vector<128x128xf32>, vector<8x128xf32> -> vector<8x128xf32>
    %c0_3 = arith.constant 0 : index
    %c0_4 = arith.constant 0 : index
    %3 = vector.load %arg3[%c0_3, %c0_4] : memref<1x128xf32, #tpu.memory_space<vmem>>, vector<1x128xf32>
    %4 = vector.broadcast %3 : vector<1x128xf32> to vector<8x128xf32>
    %5 = arith.addf %2, %4 : vector<8x128xf32>
    %cst_5 = arith.constant 0.000000e+00 : f32
    %6 = vector.broadcast %cst_5 : f32 to vector<8x128xf32>
    %7 = arith.maximumf %5, %6 : vector<8x128xf32>
    %c0_6 = arith.constant 0 : index
    %c0_7 = arith.constant 0 : index
    %8 = vector.load %arg4[%c0_6, %c0_7] : memref<128x128xf32, #tpu.memory_space<vmem>>, vector<128x128xf32>
    %cst_8 = arith.constant dense<0.000000e+00> : vector<8x128xf32>
    %9 = tpu.matmul %7, %8, %cst_8 {dimension_numbers = #tpu.dot_dimension_numbers<[1], [0], [0], [1], [0, 0, 1, 1], [], []>} : vector<8x128xf32>, vector<128x128xf32>, vector<8x128xf32> -> vector<8x128xf32>
    %c0_9 = arith.constant 0 : index
    %c0_10 = arith.constant 0 : index
    %10 = vector.load %arg5[%c0_9, %c0_10] : memref<1x128xf32, #tpu.memory_space<vmem>>, vector<1x128xf32>
    %11 = vector.broadcast %10 : vector<1x128xf32> to vector<8x128xf32>
    %12 = arith.addf %9, %11 : vector<8x128xf32>
    %c0_11 = arith.constant 0 : index
    %c0_12 = arith.constant 0 : index
    %13 = vector.load %arg6[%c0_11, %c0_12] : memref<8x128xf32, #tpu.memory_space<vmem>>, vector<8x128xf32>
    tpu.vector_store %arg6[%c0_11, %c0_12], %12 {strides = array<i32>} : memref<8x128xf32, #tpu.memory_space<vmem>>, vector<8x128xf32>,
    return
  }
  func.func @transform_0(%arg0: i32) -> (i32, i32) {
    %c0_i32 = arith.constant 0 : i32
    %c0_i32_0 = arith.constant 0 : i32
    return %arg0, %c0_i32 : i32, i32
  }
  func.func @transform_1(%arg0: i32) -> (i32, i32) {
    %c0_i32 = arith.constant 0 : i32
    %c0_i32_0 = arith.constant 0 : i32
    %c0_i32_1 = arith.constant 0 : i32
    return %c0_i32, %c0_i32_0 : i32, i32
  }
  func.func @transform_2(%arg0: i32) -> (i32, i32) {
    %c0_i32 = arith.constant 0 : i32
    %c0_i32_0 = arith.constant 0 : i32
    %c0_i32_1 = arith.constant 0 : i32
    return %c0_i32, %c0_i32_0 : i32, i32
  }
  func.func @transform_3(%arg0: i32) -> (i32, i32) {
    %c0_i32 = arith.constant 0 : i32
    %c0_i32_0 = arith.constant 0 : i32
    %c0_i32_1 = arith.constant 0 : i32
    return %c0_i32, %c0_i32_0 : i32, i32
  }
  func.func @transform_4(%arg0: i32) -> (i32, i32) {
    %c0_i32 = arith.constant 0 : i32
    %c0_i32_0 = arith.constant 0 : i32
    %c0_i32_1 = arith.constant 0 : i32
    return %c0_i32, %c0_i32_0 : i32, i32
  }
  func.func @transform_5(%arg0: i32) -> (i32, i32) {
    %c0_i32 = arith.constant 0 : i32
    %c0_i32_0 = arith.constant 0 : i32
    return %arg0, %c0_i32 : i32, i32
  }
}

</mosaic_0001>

<bundles_post_ra>
// kernel: mlp_classifier.1
= control target key start
LH: loop header
LB: loop body
LE: loop exit
PB: predicated region body
PF: predicated region fallthrough
CT: control target
= control target key end

     0   :  { %v355_v1 = vmov 0.0   ;;  %vm356_vm0 = vmmov 0   ;;  %s530_s0 = inlined_call_operand.vmem [shape: f32[8,128], index: 0, kind: input, shape index: {}]   ;;  %s531_s1 = inlined_call_operand.vmem [shape: f32[128,128], index: 1, kind: input, shape index: {}]   ;;  %s532_s2 = inlined_call_operand.vmem [shape: f32[1,128], index: 2, kind: input, shape index: {}]   ;;  %s533_s3 = inlined_call_operand.vmem [shape: f32[128,128], index: 3, kind: input, shape index: {}]   ;;  %s534_s4 = inlined_call_operand.vmem [shape: f32[1,128], index: 4, kind: input, shape index: {}]   ;;  %s535_s5 = inlined_call_operand.hbm [shape: f32[8,128], index: 5, kind: output, shape index: {}]  }
   0x1   :  { %v37_v0 = vld [vmem:[%s531_s1 + $0x78] sm:$0xff]  ;;  %260 = vmatprep.subr.mxu0 %v355_v1  ;;  %v36_v2 = vld [vmem:[%s531_s1 + $0x70] sm:$0xff]  ;;  %292 = vmatprep.mubr.msk.f32.mxu0 %vm356_vm0, %v355_v1  ;;  %v35_v3 = vld [vmem:[%s531_s1 + $0x68] sm:$0xff] }
   0x2   :  { %261 = vmatpush3.msra.mxu0 %v37_v0  ;;  %295 = vmatprep.subr.mxu1 %v355_v1  ;;  %v34_v4 = vld [vmem:[%s531_s1 + $0x60] sm:$0xff]  ;;  %v131_v5 = vld [vmem:[%s533_s3 + $0x78] sm:$0xff]  ;;  %v130_v6 = vld [vmem:[%s533_s3 + $0x70] sm:$0xff] }
   0x3   :  { %262 = vmatprep.subr.mxu0 %v355_v1  ;;  %327 = vmatprep.mubr.msk.f32.mxu1 %vm356_vm0, %v355_v1  ;;  %v33_v7 = vld [vmem:[%s531_s1 + $0x58] sm:$0xff]  ;;  %v129_v8 = vld [vmem:[%s533_s3 + $0x68] sm:$0xff]  ;;  %v32_v9 = vld [vmem:[%s531_s1 + $0x50] sm:$0xff] }
   0x4   :  { %263 = vmatpush3.msra.mxu0 %v36_v2  ;;  %296 = vmatpush3.msra.mxu1 %v131_v5  ;;  %v128_v10 = vld [vmem:[%s533_s3 + $0x60] sm:$0xff] }
   0x5   :  { %264 = vmatprep.subr.mxu0 %v355_v1  ;;  %297 = vmatprep.subr.mxu1 %v355_v1 }
   0x6   :  { %265 = vmatpush3.msra.mxu0 %v35_v3  ;;  %298 = vmatpush3.msra.mxu1 %v130_v6 }
   0x7   :  { %266 = vmatprep.subr.mxu0 %v355_v1  ;;  %299 = vmatprep.subr.mxu1 %v355_v1 }
   0x8   :  { %267 = vmatpush3.msra.mxu0 %v34_v4  ;;  %300 = vmatpush3.msra.mxu1 %v129_v8 }
   0x9   :  { %268 = vmatprep.subr.mxu0 %v355_v1 }
   0xa   :  { %269 = vmatpush3.msra.mxu0 %v33_v7 }
   0xb   :  { %10 = vsyncpa [#allocation3], 0  ;;  %270 = vmatprep.subr.mxu0 %v355_v1  ;;  %v31_v11 = vld [vmem:[%s531_s1 + $0x48] sm:$0xff]  ;;  %301 = vmatprep.subr.mxu1 %v355_v1  ;;  %v127_v12 = vld [vmem:[%s533_s3 + $0x58] sm:$0xff]  ;;  %s357_s11 = smov [#allocation2]  }
   0xc   :  { %271 = vmatpush3.msra.mxu0 %v32_v9  ;;  %302 = vmatpush3.msra.mxu1 %v128_v10  ;;  %v30_v13 = vld [vmem:[%s531_s1 + $0x40] sm:$0xff]  ;;  %v126_v14 = vld [vmem:[%s533_s3 + $0x50] sm:$0xff]  ;;  %v29_v15 = vld [vmem:[%s531_s1 + $0x38] sm:$0xff]  ;;  %s216_s12 = sshll.u32 %s357_s11, 4  ;;  %s217_s12 = int_to_ptr.vmem [resolvable:$true] %s216_s12 }
   0xd   :  { %272 = vmatprep.subr.mxu0 %v355_v1  ;;  %303 = vmatprep.subr.mxu1 %v355_v1  ;;  %v125_v16 = vld [vmem:[%s533_s3 + $0x48] sm:$0xff]  ;;  %v28_v17 = vld [vmem:[%s531_s1 + $0x30] sm:$0xff]  ;;  %v124_v18 = vld [vmem:[%s533_s3 + $0x40] sm:$0xff]  ;;  %p338_p1 = scmp.lt.s32.totalorder %s217_s12, %s217_s12 }
   0xe   :  { %273 = vmatpush3.msra.mxu0 %v31_v11  ;;  %304 = vmatpush3.msra.mxu1 %v127_v12  ;;  %v27_v19 = vld [vmem:[%s531_s1 + $0x28] sm:$0xff]  ;;  %v123_v20 = vld [vmem:[%s533_s3 + $0x38] sm:$0xff]  ;;  %v26_v21 = vld [vmem:[%s531_s1 + $0x20] sm:$0xff] }
   0xf   :  { %274 = vmatprep.subr.mxu0 %v355_v1  ;;  %305 = vmatprep.subr.mxu1 %v355_v1  ;;  %v122_v22 = vld [vmem:[%s533_s3 + $0x30] sm:$0xff]  ;;  %v25_v23 = vld [vmem:[%s531_s1 + $0x18] sm:$0xff]  ;;  %v121_v24 = vld [vmem:[%s533_s3 + $0x28] sm:$0xff] }
  0x10   :  { %275 = vmatpush3.msra.mxu0 %v30_v13  ;;  %306 = vmatpush3.msra.mxu1 %v126_v14  ;;  %v24_v25 = vld [vmem:[%s531_s1 + $0x10] sm:$0xff]  ;;  %v120_v26 = vld [vmem:[%s533_s3 + $0x20] sm:$0xff]  ;;  %v23_v27 = vld [vmem:[%s531_s1 + $0x8] sm:$0xff] }
  0x11   :  { %276 = vmatprep.subr.mxu0 %v355_v1  ;;  %307 = vmatprep.subr.mxu1 %v355_v1  ;;  %v119_v28 = vld [vmem:[%s533_s3 + $0x18] sm:$0xff]  ;;  %v22_v29 = vld [vmem:[%s531_s1] sm:$0xff]  ;;  %v118_v31 = vld [vmem:[%s533_s3 + $0x10] sm:$0xff] }
  0x12   :  { %277 = vmatpush3.msra.mxu0 %v29_v15  ;;  %308 = vmatpush3.msra.mxu1 %v125_v16  ;;  %v21_v30 = vld [vmem:[%s530_s0] sm:$0xff]  ;;  %v117_v32 = vld [vmem:[%s533_s3 + $0x8] sm:$0xff] }
  0x13   :  { %278 = vmatprep.subr.mxu0 %v355_v1  ;;  %309 = vmatprep.subr.mxu1 %v355_v1  ;;  %v116_v33 = vld [vmem:[%s533_s3] sm:$0xff]  ;;  %s333_s3 = scalar_lea.vmem %s217_s12, 128 }
  0x14   :  { %279 = vmatpush3.msra.mxu0 %v28_v17  ;;  %310 = vmatpush3.msra.mxu1 %v124_v18  ;;  %v224_v34 = vld [vmem:[%s532_s2] ss:$0 sm:$0xff]  ;;  %p334_p0 = scmp.ne.s32.totalorder %s217_s12, %s333_s3  ;;  %p339_p2 = scmp.lt.s32.totalorder %s333_s3, %s333_s3 }
  0x15   :  { %280 = vmatprep.subr.mxu0 %v355_v1  ;;  %311 = vmatprep.subr.mxu1 %v355_v1  ;;  %v225_v39 = vld [vmem:[%s534_s4] ss:$0 sm:$0xff] }
  0x16   :  { %281 = vmatpush3.msra.mxu0 %v27_v19  ;;  %312 = vmatpush3.msra.mxu1 %v123_v20  ;;  %p340_p3 = por %p339_p2, %p338_p1 }
  0x17   :  { %282 = vmatprep.subr.mxu0 %v355_v1  ;;  %313 = vmatprep.subr.mxu1 %v355_v1 }
  0x18   :  { %283 = vmatpush3.msra.mxu0 %v26_v21  ;;  %314 = vmatpush3.msra.mxu1 %v122_v22  ;;  %p341_p4 = pnand %p340_p3, %p334_p0 }
  0x19   :  { %284 = vmatprep.subr.mxu0 %v355_v1  ;;  %315 = vmatprep.subr.mxu1 %v355_v1 }
  0x1a   :  { %285 = vmatpush3.msra.mxu0 %v25_v23  ;;  %316 = vmatpush3.msra.mxu1 %v121_v24 }
  0x1b   :  { %286 = vmatprep.subr.mxu0 %v355_v1  ;;  %317 = vmatprep.subr.mxu1 %v355_v1 }
  0x1c   :  { %287 = vmatpush3.msra.mxu0 %v24_v25  ;;  %318 = vmatpush3.msra.mxu1 %v120_v26 }
  0x1d   :  { %288 = vmatprep.subr.mxu0 %v355_v1  ;;  %319 = vmatprep.subr.mxu1 %v355_v1 }
  0x1e   :  { %289 = vmatpush3.msra.mxu0 %v23_v27  ;;  %320 = vmatpush3.msra.mxu1 %v119_v28 }
  0x1f   :  { %290 = vmatprep.subr.mxu0 %v355_v1  ;;  %321 = vmatprep.subr.mxu1 %v355_v1 }
  0x20   :  { %291 = vmatpush3.msra.mxu0 %v22_v29  ;;  %322 = vmatpush3.msra.mxu1 %v118_v31 }
  0x21   :  { %293 = vmatmul.mubr.f32.vlgmr.msra.gmra.mxu0 %v21_v30  ;;  %323 = vmatprep.subr.mxu1 %v355_v1 }
  0x22   :  { %324 = vmatpush3.msra.mxu1 %v117_v32 }
  0x23   :  { %325 = vmatprep.subr.mxu1 %v355_v1 }
  0x24   :  { %326 = vmatpush3.msra.mxu1 %v116_v33 }
  0xe1   :  { %v111_v35 = vpop.f32.mrf.mxu0 }
  0xe2   :  { %v112_v36 = vadd.f32 %v224_v34, %v111_v35 }
  0xe3   :  { %v294_v37 = vpop.f32.mrf.mxu0 }
  0xe4   :  { %v115_v38 = vmax.f32 %v112_v36, 0.0 }
  0xe6   :  { %328 = vmatmul.mubr.f32.vlgmr.msra.gmra.mxu1 %v115_v38 }
 0x1a6   :  { %v205_v40 = vpop.f32.mrf.mxu1 }
 0x1a7   :  { %v206_v41 = vadd.f32 %v225_v39, %v205_v40 }
 0x1a8   :  { %v329_v42 = vpop.f32.mrf.mxu1 }
 0x1a9   :  { %209 = vst [vmem:[#allocation2] sm:$0xff] %v206_v41 }
 0x1aa   :  { %344 = shalt.err (!%p341_p4)
}
 0x1ab   :  { %219 = dma.vmem_to_hbm [thread:$0]  %s217_s12, 128, %s535_s5, [#allocation3]  }
 0x1ac   :  { %353 = dma.done.wait [#allocation3], 128  }
 0x1ad   :  { %354 = vsyncadd [#allocation3], 4294967168 }
 0x1ae   :  { %223 = vsyncpa [#allocation3], 1 }

</bundles_post_ra>
